<compile_context>
chip_gen: v6e
topology: v6e:2x2x1
jax: 0.10.0
libtpu: 0.0.40
codegen_flags: <defaults>
</compile_context>

<pallas_src>
import math
import functools

import jax
import jax.numpy as jnp
from jax.experimental import pallas as pl
from jax.experimental.pallas import tpu as pltpu


_NEG_SLOPE = 0.01  # F.leaky_relu default negative_slope


def _round_up(x, m):
    return ((x + m - 1) // m) * m


def positional_encoding_vec(t, n):
    """Length-n PE vector: sin(t / 1000**(2i/n)) for even i, cos(...) for odd i.

    Matches the PyTorch module's positional_encoding exactly (base 1000, per-index
    exponent 2*i/n, parity select) -- intentionally NOT the classic base-10000 PE.
    """
    idx = jnp.arange(n, dtype=jnp.float32)
    denom = jnp.power(1000.0, 2.0 * idx / float(n))
    return jnp.where(jnp.arange(n) % 2 == 0, jnp.sin(t / denom), jnp.cos(t / denom))


def _het_update_kernel(cur_ref, past_ref, wqv_ref, wk_ref, consts_ref, out_ref):
    """Fused (q|v) matmul + k matmul + gating + leaky_relu on one (TM, cp) row tile.

    cur_ref/past_ref : (TM, cp)   packed rows (p original C-wide rows per packed row)
    wqv_ref          : (cp, 2cp)  block-diagonal [Wq | Wv]
    wk_ref           : (cp, cp)   block-diagonal Wk
    consts_ref       : (8, 2cp)   f32; row0 = bias(q|v) with PE folded in, row1[:cp] = bias(k)
    """
    cp = wk_ref.shape[0]
    bqv = consts_ref[0:1, :]            # (1, 2cp)
    bk = consts_ref[1:2, :cp]           # (1, cp)

    qv = jnp.dot(cur_ref[...], wqv_ref[...],
                 preferred_element_type=jnp.float32) + bqv      # (TM, 2cp) f32
    k = jnp.dot(past_ref[...], wk_ref[...],
                preferred_element_type=jnp.float32) + bk        # (TM, cp)  f32

    q = qv[:, :cp]
    v = qv[:, cp:]
    g = q * k * v
    out_ref[...] = jnp.where(g >= 0, g, _NEG_SLOPE * g).astype(out_ref.dtype)


def prepare_params(wq_t, bq, wk_t, bk, wv_t, bv, pe_cur, pe_past,
                   compute_dtype=jnp.bfloat16):
    """One-time packing: fold PE into biases, block-diag lane packing, Wq|Wv fusion.

    Returns (wqv, wk_blk, consts, p, cp):
      p  : original rows packed per 128-lane row (1 if C >= 128 or C does not divide 128)
      cp : lane width of a packed row (multiple of 128)
    """
    c = wq_t.shape[0]
    if c < 128 and 128 % c == 0:
        p = 128 // c
        cp = 128
    else:
        p = 1
        cp = _round_up(c, 128)

    # (x + pe) @ W + b == x @ W + (pe @ W + b): fold the PE add into the bias.
    bq_eff = pe_cur @ wq_t + bq
    bk_eff = pe_past @ wk_t + bk
    bv_eff = pe_cur @ wv_t + bv

    def wblock(w):
        if p > 1:
            # block-diagonal: each C-wide chunk of a packed row transforms independently
            return jnp.kron(jnp.eye(p, dtype=jnp.float32), w)
        return jnp.pad(w, ((0, cp - c), (0, cp - c)))

    def bfull(b):
        return jnp.tile(b, p) if p > 1 else jnp.pad(b, (0, cp - c))

    wqv = jnp.concatenate([wblock(wq_t), wblock(wv_t)], axis=1).astype(compute_dtype)
    wk_blk = wblock(wk_t).astype(compute_dtype)

    consts = jnp.zeros((8, 2 * cp), jnp.float32)
    consts = consts.at[0, :cp].set(bfull(bq_eff))
    consts = consts.at[0, cp:].set(bfull(bv_eff))
    consts = consts.at[1, :cp].set(bfull(bk_eff))
    return wqv, wk_blk, consts, p, cp


@functools.partial(
    jax.jit,
    static_argnames=("p", "cp", "tm_max", "stream_dtype", "out_dtype"))
def het_node_update_forward(cur_parts, past_parts, wqv, wk_blk, consts, *,
                            p, cp, tm_max=2048,
                            stream_dtype=jnp.bfloat16, out_dtype=jnp.float32):
    """Run the fused update over all node-type groups in ONE gridded pallas_call."""
    sizes = tuple(x.shape[0] for x in cur_parts)
    c = cur_parts[0].shape[1]
    n = sum(sizes)
    n_pad = _round_up(max(n, p), p)              # only align to the packing factor

    pad_blk = ([jnp.zeros((n_pad - n, c), cur_parts[0].dtype)] if n_pad > n else [])
    cur_all = jnp.concatenate(list(cur_parts) + pad_blk, axis=0).astype(stream_dtype)
    past_all = jnp.concatenate(list(past_parts) + pad_blk, axis=0).astype(stream_dtype)

    if p > 1:
        cur_pk = cur_all.reshape(n_pad // p, cp)      # free row-major repack to 128 lanes
        past_pk = past_all.reshape(n_pad // p, cp)
    else:
        cur_pk = jnp.pad(cur_all, ((0, 0), (0, cp - c)))
        past_pk = jnp.pad(past_all, ((0, 0), (0, cp - c)))
    n_rows = cur_pk.shape[0]

    # --- row-tile selection ---------------------------------------------------------
    sbytes = jnp.dtype(stream_dtype).itemsize
    obytes = jnp.dtype(out_dtype).itemsize
    # weights counted double-buffered (conservative) against a v7x-safe VMEM budget
    wbytes = 2 * (wqv.size + wk_blk.size) * jnp.dtype(wqv.dtype).itemsize
    vmem_budget = 24 * 1024 * 1024
    row_cost = 2 * cp * (2 * sbytes + obytes)          # 2 in streams + 1 out, x2 buffers
    max_tm = max(16, int((vmem_budget - wbytes) // row_cost) // 16 * 16)
    # target >= 4 grid steps so the "parallel" row axis can shard across both v7x TCs
    tm = max(16, min(tm_max, max_tm, _round_up(pl.cdiv(n_rows, 4), 16)))
    grid = (pl.cdiv(n_rows, tm),)                      # last block may be partial

    out = pl.pallas_call(
        _het_update_kernel,
        out_shape=jax.ShapeDtypeStruct((n_rows, cp), out_dtype),
        grid_spec=pltpu.PrefetchScalarGridSpec(
            num_scalar_prefetch=0,
            grid=grid,
            in_specs=[
                pl.BlockSpec((tm, cp), lambda i: (i, 0)),        # packed current rows
                pl.BlockSpec((tm, cp), lambda i: (i, 0)),        # packed past rows
                pl.BlockSpec((cp, 2 * cp), lambda i: (0, 0)),    # [Wq|Wv] (VMEM-resident)
                pl.BlockSpec((cp, cp), lambda i: (0, 0)),        # Wk      (VMEM-resident)
                pl.BlockSpec((8, 2 * cp), lambda i: (0, 0)),     # folded biases
            ],
            out_specs=pl.BlockSpec((tm, cp), lambda i: (i, 0)),
        ),
        compiler_params=pltpu.CompilerParams(
            dimension_semantics=("parallel",),
            vmem_limit_bytes=32 * 1024 * 1024,
        ),
    )(cur_pk, past_pk, wqv, wk_blk, consts)

    out_flat = out.reshape(n_pad, c) if p > 1 else out[:, :c]
    outs = []
    off = 0
    for s in sizes:
        outs.append(out_flat[off:off + s])
        off += s
    return tuple(outs)


class HetNodeUpdatePE:
    """JAX/Pallas port of the PyTorch HetNodeUpdatePE module (forward pass only)."""

    def __init__(self, in_channels, metadata, key,
                 stream_dtype=jnp.bfloat16, compute_dtype=jnp.bfloat16):
        self.in_channels = in_channels
        self.metadata = metadata
        self.stream_dtype = stream_dtype
        C = in_channels
        bound = 1.0 / math.sqrt(C)
        ks = jax.random.split(key, 6)
        # torch Linear stores (out, in); keep pre-transposed (in, out) so x @ W_t.
        self.wq_t = jax.random.uniform(ks[0], (C, C), jnp.float32, -bound, bound)
        self.bq = jax.random.uniform(ks[1], (C,), jnp.float32, -bound, bound)
        self.wk_t = jax.random.uniform(ks[2], (C, C), jnp.float32, -bound, bound)
        self.bk = jax.random.uniform(ks[3], (C,), jnp.float32, -bound, bound)
        self.wv_t = jax.random.uniform(ks[4], (C, C), jnp.float32, -bound, bound)
        self.bv = jax.random.uniform(ks[5], (C,), jnp.float32, -bound, bound)
        # Positional encodings depend only on (t, C); precompute once.
        self.pe_cur = positional_encoding_vec(1.0, C)    # t = 1 (current)
        self.pe_past = positional_encoding_vec(0.0, C)   # t = 0 (past)
        # One-time weight packing, reused by every forward call.
        (self.wqv, self.wk_blk, self.consts, self.p, self.cp) = prepare_params(
            self.wq_t, self.bq, self.wk_t, self.bk, self.wv_t, self.bv,
            self.pe_cur, self.pe_past, compute_dtype=compute_dtype)

    def __call__(self, current_in_dict, past_in_dict):
        node_types = list(current_in_dict.keys())
        cur_parts = tuple(current_in_dict[nt] for nt in node_types)
        past_parts = tuple(past_in_dict[nt] for nt in node_types)
        outs = het_node_update_forward(
            cur_parts, past_parts, self.wqv, self.wk_blk, self.consts,
            p=self.p, cp=self.cp, stream_dtype=self.stream_dtype)
        return dict(zip(node_types, outs))


if __name__ == "__main__":
    key = jax.random.PRNGKey(0)
    in_channels = 32
    num_nodes = {"user": 8, "item": 12}
    metadata = (list(num_nodes.keys()), [])

    k_mod, k_data = jax.random.split(key)
    model = HetNodeUpdatePE(in_channels, metadata, k_mod)

    current_in_dict, past_in_dict = {}, {}
    for nt, n in num_nodes.items():
        k_data, k1, k2 = jax.random.split(k_data, 3)
        current_in_dict[nt] = jax.random.normal(k1, (n, in_channels), jnp.float32)
        past_in_dict[nt] = jax.random.normal(k2, (n, in_channels), jnp.float32)

    out_dict = model(current_in_dict, past_in_dict)
    jax.block_until_ready(list(out_dict.values()))

    # Plain-JAX f32 reference of the module's forward math (unfused form).
    def ref_one(cur, past):
        cur_pe = cur + model.pe_cur
        past_pe = past + model.pe_past
        q = cur_pe @ model.wq_t + model.bq
        k = past_pe @ model.wk_t + model.bk
        v = cur_pe @ model.wv_t + model.bv
        g = q * k * v
        return jnp.where(g >= 0, g, _NEG_SLOPE * g)

    # Streams/weights are bf16 with f32 accumulation -> tolerance sized for bf16.
    for nt, n in num_nodes.items():
        ref = ref_one(current_in_dict[nt], past_in_dict[nt])
        got = out_dict[nt]
        assert got.shape == (n, in_channels)
        assert got.dtype == jnp.float32
        assert jnp.allclose(got, ref, atol=3e-2, rtol=3e-2), (
            nt, float(jnp.max(jnp.abs(got - ref))))

    print("KERNEL_OK")
</pallas_src>

<mosaic_0001>
module attributes {stable_mosaic.version = 11 : i64} {
  func.func @_het_update_kernel(%arg0: i32, %arg1: memref<16x128xbf16, #tpu.memory_space<vmem>>, %arg2: memref<16x128xbf16, #tpu.memory_space<vmem>>, %arg3: memref<128x256xbf16, #tpu.memory_space<vmem>>, %arg4: memref<128x128xbf16, #tpu.memory_space<vmem>>, %arg5: memref<8x256xf32, #tpu.memory_space<vmem>>, %arg6: memref<16x128xf32, #tpu.memory_space<vmem>>) attributes {dimension_semantics = [#tpu.dimension_semantics<parallel>], iteration_bounds = array<i64: 1>, scalar_prefetch = 0 : i64, scratch_operands = 0 : i64, tpu.core_type = #tpu.core_type<tc>, window_params = [{transform_indices = @transform_0, window_bounds = array<i64: 16, 128>}, {transform_indices = @transform_1, window_bounds = array<i64: 16, 128>}, {pipeline_mode = #tpu.pipeline_mode<synchronous>, transform_indices = @transform_2, window_bounds = array<i64: 128, 256>}, {pipeline_mode = #tpu.pipeline_mode<synchronous>, transform_indices = @transform_3, window_bounds = array<i64: 128, 128>}, {pipeline_mode = #tpu.pipeline_mode<synchronous>, transform_indices = @transform_4, window_bounds = array<i64: 8, 256>}, {transform_indices = @transform_5, window_bounds = array<i64: 16, 128>}]} {
    %c0 = arith.constant 0 : index
    %c0_0 = arith.constant 0 : index
    %0 = vector.load %arg5[%c0, %c0_0] : memref<8x256xf32, #tpu.memory_space<vmem>>, vector<1x256xf32>
    %c1 = arith.constant 1 : index
    %c0_1 = arith.constant 0 : index
    %1 = vector.load %arg5[%c1, %c0_1] : memref<8x256xf32, #tpu.memory_space<vmem>>, vector<1x128xf32>
    %c0_2 = arith.constant 0 : index
    %c0_3 = arith.constant 0 : index
    %2 = vector.load %arg1[%c0_2, %c0_3] : memref<16x128xbf16, #tpu.memory_space<vmem>>, vector<16x128xbf16>
    %c0_4 = arith.constant 0 : index
    %c0_5 = arith.constant 0 : index
    %3 = vector.load %arg3[%c0_4, %c0_5] : memref<128x256xbf16, #tpu.memory_space<vmem>>, vector<128x256xbf16>
    %cst = arith.constant dense<0.000000e+00> : vector<16x256xf32>
    %4 = tpu.matmul %2, %3, %cst {dimension_numbers = #tpu.dot_dimension_numbers<[1], [0], [0], [1], [0, 0, 1, 1], [], []>} : vector<16x128xbf16>, vector<128x256xbf16>, vector<16x256xf32> -> vector<16x256xf32>
    %5 = vector.broadcast %0 : vector<1x256xf32> to vector<16x256xf32>
    %6 = arith.addf %4, %5 : vector<16x256xf32>
    %c0_6 = arith.constant 0 : index
    %c0_7 = arith.constant 0 : index
    %7 = vector.load %arg2[%c0_6, %c0_7] : memref<16x128xbf16, #tpu.memory_space<vmem>>, vector<16x128xbf16>
    %c0_8 = arith.constant 0 : index
    %c0_9 = arith.constant 0 : index
    %8 = vector.load %arg4[%c0_8, %c0_9] : memref<128x128xbf16, #tpu.memory_space<vmem>>, vector<128x128xbf16>
    %cst_10 = arith.constant dense<0.000000e+00> : vector<16x128xf32>
    %9 = tpu.matmul %7, %8, %cst_10 {dimension_numbers = #tpu.dot_dimension_numbers<[1], [0], [0], [1], [0, 0, 1, 1], [], []>} : vector<16x128xbf16>, vector<128x128xbf16>, vector<16x128xf32> -> vector<16x128xf32>
    %10 = vector.broadcast %1 : vector<1x128xf32> to vector<16x128xf32>
    %11 = arith.addf %9, %10 : vector<16x128xf32>
    %12 = vector.extract_strided_slice %6 {offsets = [0, 0], sizes = [16, 128], strides = [1, 1]} : vector<16x256xf32> to vector<16x128xf32>
    %13 = vector.extract_strided_slice %6 {offsets = [0, 128], sizes = [16, 128], strides = [1, 1]} : vector<16x256xf32> to vector<16x128xf32>
    %14 = arith.mulf %12, %11 : vector<16x128xf32>
    %15 = arith.mulf %14, %13 : vector<16x128xf32>
    %cst_11 = arith.constant 0.000000e+00 : f32
    %16 = vector.broadcast %cst_11 : f32 to vector<16x128xf32>
    %17 = arith.cmpf oge, %15, %16 : vector<16x128xf32>
    %cst_12 = arith.constant 0.00999999977 : f32
    %18 = vector.broadcast %cst_12 : f32 to vector<16x128xf32>
    %19 = arith.mulf %18, %15 : vector<16x128xf32>
    %20 = arith.select %17, %15, %19 : vector<16x128xi1>, vector<16x128xf32>
    %c0_13 = arith.constant 0 : index
    %c0_14 = arith.constant 0 : index
    %21 = vector.load %arg6[%c0_13, %c0_14] : memref<16x128xf32, #tpu.memory_space<vmem>>, vector<16x128xf32>
    tpu.vector_store %arg6[%c0_13, %c0_14], %20 {strides = array<i32>} : memref<16x128xf32, #tpu.memory_space<vmem>>, vector<16x128xf32>,
    return
  }
  func.func @transform_0(%arg0: i32) -> (i32, i32) {
    %c0_i32 = arith.constant 0 : i32
    %c0_i32_0 = arith.constant 0 : i32
    return %arg0, %c0_i32 : i32, i32
  }
  func.func @transform_1(%arg0: i32) -> (i32, i32) {
    %c0_i32 = arith.constant 0 : i32
    %c0_i32_0 = arith.constant 0 : i32
    return %arg0, %c0_i32 : i32, i32
  }
  func.func @transform_2(%arg0: i32) -> (i32, i32) {
    %c0_i32 = arith.constant 0 : i32
    %c0_i32_0 = arith.constant 0 : i32
    %c0_i32_1 = arith.constant 0 : i32
    return %c0_i32, %c0_i32_0 : i32, i32
  }
  func.func @transform_3(%arg0: i32) -> (i32, i32) {
    %c0_i32 = arith.constant 0 : i32
    %c0_i32_0 = arith.constant 0 : i32
    %c0_i32_1 = arith.constant 0 : i32
    return %c0_i32, %c0_i32_0 : i32, i32
  }
  func.func @transform_4(%arg0: i32) -> (i32, i32) {
    %c0_i32 = arith.constant 0 : i32
    %c0_i32_0 = arith.constant 0 : i32
    %c0_i32_1 = arith.constant 0 : i32
    return %c0_i32, %c0_i32_0 : i32, i32
  }
  func.func @transform_5(%arg0: i32) -> (i32, i32) {
    %c0_i32 = arith.constant 0 : i32
    %c0_i32_0 = arith.constant 0 : i32
    return %arg0, %c0_i32 : i32, i32
  }
}

</mosaic_0001>

<bundles_post_ra>
// kernel: het_node_update_forward.1
= control target key start
LH: loop header
LB: loop body
LE: loop exit
PB: predicated region body
PF: predicated region fallthrough
CT: control target
= control target key end

     0   :  { %10 = vsyncpa [#allocation3], 0  ;;  %s479_s18 = smov [#allocation2]   ;;  %s581_s0 = inlined_call_operand.vmem [shape: bf16[5,128], index: 0, kind: input, shape index: {}]   ;;  %s582_s1 = inlined_call_operand.vmem [shape: bf16[5,128], index: 1, kind: input, shape index: {}]   ;;  %s583_s2 = inlined_call_operand.vmem [shape: bf16[128,256], index: 2, kind: input, shape index: {}]   ;;  %s584_s3 = inlined_call_operand.hbm [shape: bf16[128,128], index: 3, kind: input, shape index: {}]   ;;  %s585_s4 = inlined_call_operand.vmem [shape: f32[8,256], index: 4, kind: input, shape index: {}]   ;;  %s586_s5 = inlined_call_operand.vmem [shape: f32[5,128], index: 5, kind: output, shape index: {}]  }
   0x1   :  { %s22_s19 = sshll.u32 %s479_s18, 4  ;;  %s23_s19 = int_to_ptr.vmem [resolvable:$true] %s22_s19 }
   0x2   :  { %s465_s20 = scalar_lea.vmem %s23_s19, 1024  ;;  %p470_p1 = scmp.lt.s32.totalorder %s23_s19, %s23_s19 }
   0x3   :  { %p466_p0 = scmp.ne.s32.totalorder %s23_s19, %s465_s20  ;;  %p471_p2 = scmp.lt.s32.totalorder %s465_s20, %s465_s20 }
   0x5   :  { %p472_p3 = por %p471_p2, %p470_p1 }
   0x7   :  { %p473_p4 = pnand %p472_p3, %p466_p0 }
   0x9   :  { %476 = shalt.err (!%p473_p4)
}
   0xa   :  { %s480_s21 = smov 64   ;;  %s481_s22 = smov 4  }
   0xb   :  { %28 = dma.hbm_to_vmem [thread:$0]  %s584_s3, 1024, %s23_s19, [#allocation3], %s480_s21, %s480_s21, %s481_s22  }
   0xc   :  { %477 = dma.done.wait [#allocation3], 1024  }
   0xd   :  { %478 = vsyncadd [#allocation3], 4294966272  ;;  %v482_v0 = vmov 0.0   ;;  %vm483_vm0 = vmmov 0   ;;  %v484_v1 = vmov 0   ;;  %v425_v3 = vld [vmem:[#allocation2 + $0x38] sm:$0xff]   ;;  %v56_v28 = vlaneseq }
   0xe   :  { %397 = vmatprep.subr.bf16.mxu1 %v482_v0  ;;  %413 = vmatprep.mubr.msk.bf16.mxu1 %vm483_vm0, %v482_v0  ;;  %v423_v2 = vld [vmem:[%s583_s2 + $0x74] ss:$8 sps:$4 sm:$0xff]   ;;  %v426_v4 = vld [vmem:[%s583_s2 + $0x70] ss:$8 sps:$4 sm:$0xff]   ;;  %v427_v5 = vld [vmem:[%s583_s2 + $0x64] ss:$8 sps:$4 sm:$0xff]  }
   0xf   :  { %184 = vmatprep.mubr.bf16.mxu0 %v484_v1  ;;  %152 = vmatprep.subr.bf16.mxu0 %v423_v2  ;;  %v429_v6 = vld [vmem:[#allocation2 + $0x30] sm:$0xff]   ;;  %v430_v7 = vld [vmem:[%s583_s2 + $0x60] ss:$8 sps:$4 sm:$0xff]   ;;  %v435_v11 = vld [vmem:[%s583_s2 + $0x44] ss:$8 sps:$4 sm:$0xff]   ;;  %v57_v29 = vshrl.u32 %v56_v28, 7 }
  0x10   :  { %398 = vmatpush3.bf16.msra.mxu1 %v425_v3  ;;  %153 = vmatpush1.bf16.msra.mxu0 %v426_v4  ;;  %v431_v8 = vld [vmem:[%s583_s2 + $0x54] ss:$8 sps:$4 sm:$0xff]   ;;  %v433_v9 = vld [vmem:[#allocation2 + $0x28] sm:$0xff]   ;;  %v434_v10 = vld [vmem:[%s583_s2 + $0x50] ss:$8 sps:$4 sm:$0xff]  }
  0x11   :  { %399 = vmatprep.subr.bf16.mxu1 %v482_v0  ;;  %154 = vmatprep.subr.bf16.mxu0 %v427_v5  ;;  %v437_v12 = vld [vmem:[#allocation2 + $0x20] sm:$0xff]   ;;  %v439_v14 = vld [vmem:[%s583_s2 + $0x34] ss:$8 sps:$4 sm:$0xff]   ;;  %v442_v16 = vld [vmem:[%s583_s2 + $0x30] ss:$8 sps:$4 sm:$0xff]   ;;  %v58_v30 = vsub.s32 0, %v57_v29 }
  0x12   :  { %v438_v13 = vld [vmem:[%s583_s2 + $0x40] ss:$8 sps:$4 sm:$0xff]   ;;  %v441_v15 = vld [vmem:[#allocation2 + $0x18] sm:$0xff]   ;;  %v443_v17 = vld [vmem:[%s583_s2 + $0x24] ss:$8 sps:$4 sm:$0xff]   ;;  %v62_v32 = vsub.s32 1, %v57_v29 }
  0x13   :  { %v445_v18 = vld [vmem:[#allocation2 + $0x10] sm:$0xff]   ;;  %v446_v19 = vld [vmem:[%s583_s2 + $0x20] ss:$8 sps:$4 sm:$0xff]   ;;  %v451_v23 = vld [vmem:[%s583_s2 + $0x4] ss:$8 sps:$4 sm:$0xff]  }
  0x14   :  { %400 = vmatpush3.bf16.msra.mxu1 %v429_v6  ;;  %155 = vmatpush1.bf16.msra.mxu0 %v430_v7  ;;  %v447_v20 = vld [vmem:[%s583_s2 + $0x14] ss:$8 sps:$4 sm:$0xff]   ;;  %v449_v21 = vld [vmem:[#allocation2 + $0x8] sm:$0xff]   ;;  %v450_v22 = vld [vmem:[%s583_s2 + $0x10] ss:$8 sps:$4 sm:$0xff]  }
  0x15   :  { %401 = vmatprep.subr.bf16.mxu1 %v482_v0  ;;  %156 = vmatprep.subr.bf16.mxu0 %v431_v8  ;;  %v453_v24 = vld [vmem:[#allocation2] sm:$0xff]  }
  0x16   :  { %v454_v25 = vld [vmem:[%s583_s2] ss:$8 sps:$4 sm:$0xff]  }
  0x17   :  { %v455_v26 = vld [vmem:[%s582_s1] sm:$0xff]  }
  0x18   :  { %402 = vmatpush3.bf16.msra.mxu1 %v433_v9  ;;  %157 = vmatpush1.bf16.msra.mxu0 %v434_v10  ;;  %v456_v27 = vld [vmem:[%s581_s0] sm:$0xff]  }
  0x19   :  { %403 = vmatprep.subr.bf16.mxu1 %v482_v0  ;;  %158 = vmatprep.subr.bf16.mxu0 %v435_v11  ;;  %v35_v31 = vld [vmem:[%s585_s4] ss:$8 sm:$0x3]  ;;  %v36_v33 = vld [vmem:[%s585_s4 + $0x1] ss:$0 sm:$0xff] }
  0x1a   :  { %v59_v34 = vrot.slane %v35_v31, %v58_v30  ;;  %v63_v36 = vrot.slane %v35_v31, %v62_v32 }
  0x1c   :  { %404 = vmatpush3.bf16.msra.mxu1 %v437_v12  ;;  %159 = vmatpush1.bf16.msra.mxu0 %v438_v13 }
  0x1d   :  { %405 = vmatprep.subr.bf16.mxu1 %v482_v0  ;;  %160 = vmatprep.subr.bf16.mxu0 %v439_v14 }
  0x20   :  { %406 = vmatpush3.bf16.msra.mxu1 %v441_v15  ;;  %161 = vmatpush1.bf16.msra.mxu0 %v442_v16 }
  0x21   :  { %407 = vmatprep.subr.bf16.mxu1 %v482_v0  ;;  %162 = vmatprep.subr.bf16.mxu0 %v443_v17 }
  0x24   :  { %408 = vmatpush3.bf16.msra.mxu1 %v445_v18  ;;  %163 = vmatpush1.bf16.msra.mxu0 %v446_v19 }
  0x25   :  { %409 = vmatprep.subr.bf16.mxu1 %v482_v0  ;;  %164 = vmatprep.subr.bf16.mxu0 %v447_v20 }
  0x28   :  { %410 = vmatpush3.bf16.msra.mxu1 %v449_v21  ;;  %165 = vmatpush1.bf16.msra.mxu0 %v450_v22 }
  0x29   :  { %411 = vmatprep.subr.bf16.mxu1 %v482_v0  ;;  %166 = vmatprep.subr.bf16.mxu0 %v451_v23 }
  0x2c   :  { %412 = vmatpush3.bf16.msra.mxu1 %v453_v24  ;;  %167 = vmatpush1.bf16.msra.mxu0 %v454_v25 }
  0x2f   :  { %414 = vmatmul.mubr.bf16.vlgmr.msra.gmra.mxu1 %v455_v26  ;;  %185 = vmatmul.mubr.bf16.vlgmr.msra.gmra.mxu0 %v456_v27 }
  0xef   :  { %v301_v35 = vpop.f32.mrf.mxu1  ;;  %v186_v38 = vpop.f32.mrf.mxu0 }
  0xf0   :  { %v302_v37 = vadd.f32 %v301_v35, %v36_v33  ;;  %v187_v39 = vadd.f32 %v186_v38, %v59_v34 }
  0xf1   :  { %v415_v40 = vpop.f32.mrf.mxu1  ;;  %v188_v41 = vpop.f32.mrf.mxu0 }
  0xf2   :  { %v308_v42 = vmul.f32 %v302_v37, %v187_v39  ;;  %v189_v43 = vadd.f32 %v188_v41, %v63_v36 }
  0xf3   :  { %v304_v44 = vpop.f32.mrf.mxu1  ;;  %v190_v45 = vpop.f32.mrf.mxu0 }
  0xf4   :  { %v310_v46 = vmul.f32 %v308_v42, %v189_v43 }
  0xf5   :  { %v416_v47 = vpop.f32.mrf.mxu1  ;;  %v192_v48 = vpop.f32.mrf.mxu0 }
  0xf6   :  { %vm312_vm1 = vcmp.ge.f32.partialorder %v310_v46, 0.0  ;;  %v314_v49 = vmul.f32 0.01, %v310_v46 }
  0xf8   :  { %v316_v50 = vsel %vm312_vm1, %v310_v46, %v314_v49 }
  0xf9   :  { %351 = vst [vmem:[%s586_s5] sm:$0xff] %v316_v50 }
  0xfa   :  { %357 = vsyncpa [#allocation3], 1 }

</bundles_post_ra>
